<compile_context>
chip_gen: v5e
topology: v5e:2x2
jax: 0.10.0
libtpu: 0.0.40
codegen_flags: <defaults>
</compile_context>

<pallas_src>
import functools

import jax
import jax.numpy as jnp
from jax.experimental import pallas as pl
from jax.experimental.pallas import tpu as pltpu

LANES = 128
MAX_TILE_ROWS = 1024  # (1024, 128) f32 = 512 KiB per input per pipeline buffer


def _rmse_partial_kernel(yhat_ref, y_ref, o_ref, acc_ref, *,
                         tile_rows, tiles_per_core, total_rows, needs_mask):
    """Per-core partial sum of squared differences.

    Grid = (split, tiles_per_core): axis 0 is 'parallel' (megacore split),
    axis 1 is the sequential reduction over row tiles. acc_ref is a
    full-tile f32 VMEM scratch so the per-step critical path is pure VPU;
    the one cross-lane reduction happens only on the final step.
    """
    c = pl.program_id(0)
    i = pl.program_id(1)

    @pl.when(i == 0)
    def _():
        acc_ref[...] = jnp.zeros_like(acc_ref)

    d = yhat_ref[...].astype(jnp.float32) - y_ref[...].astype(jnp.float32)

    if needs_mask:
        # Last row tile may extend past the real array; out-of-bounds rows
        # hold garbage, so zero them with a select (safe even vs NaN/Inf).
        row = jax.lax.broadcasted_iota(jnp.int32, (tile_rows, LANES), 0)
        global_row = (c * tiles_per_core + i) * tile_rows + row
        d = jnp.where(global_row < total_rows, d, 0.0)

    acc_ref[...] += d * d

    @pl.when(i == pl.num_programs(1) - 1)
    def _():
        o_ref[...] = jnp.sum(acc_ref[...]).reshape(1, 1)


def rmse_pallas(y_hat: jax.Array, y: jax.Array) -> jax.Array:
    """Root mean squared error over all elements, computed on-TPU via Pallas."""
    assert y_hat.shape == y.shape, "y_hat and y must have the same shape"
    n_elems = y_hat.size

    flat_hat = jnp.ravel(y_hat)
    flat_y = jnp.ravel(y)

    # Only pad when numel is not a multiple of 128 (the reshape below is then
    # impossible otherwise). Zero padding contributes 0 to the squared-diff
    # sum (both tensors padded identically); we divide by the true numel.
    rem = n_elems % LANES
    if rem:
        pad = LANES - rem
        flat_hat = jnp.pad(flat_hat, (0, pad))
        flat_y = jnp.pad(flat_y, (0, pad))
    rows = flat_hat.size // LANES
    slab_hat = flat_hat.reshape(rows, LANES)  # free: contiguous reshape
    slab_y = flat_y.reshape(rows, LANES)

    # Pick the largest row tile that fits comfortably in VMEM.
    tile_rows = rows if rows <= MAX_TILE_ROWS else MAX_TILE_ROWS
    num_tiles = pl.cdiv(rows, tile_rows)

    # Split the reduction across the two TensorCores (v7x) when the tile count
    # divides evenly; on v5e/v6e (1 TC) the extra axis is just a serial loop.
    split = 2 if (num_tiles >= 2 and num_tiles % 2 == 0) else 1
    tiles_per_core = num_tiles // split

    needs_mask = (rows % tile_rows) != 0

    kernel = functools.partial(
        _rmse_partial_kernel,
        tile_rows=tile_rows,
        tiles_per_core=tiles_per_core,
        total_rows=rows,
        needs_mask=needs_mask,
    )

    in_spec = pl.BlockSpec((tile_rows, LANES),
                           lambda c, i: (c * tiles_per_core + i, 0))

    partial_sums = pl.pallas_call(
        kernel,
        out_shape=jax.ShapeDtypeStruct((split, 1), jnp.float32),
        grid_spec=pltpu.PrefetchScalarGridSpec(
            num_scalar_prefetch=0,
            grid=(split, tiles_per_core),
            in_specs=[in_spec, in_spec],
            out_specs=pl.BlockSpec((1, 1), lambda c, i: (c, 0)),
            scratch_shapes=[pltpu.VMEM((tile_rows, LANES), jnp.float32)],
        ),
        compiler_params=pltpu.CompilerParams(
            dimension_semantics=("parallel", "arbitrary")),
    )(slab_hat, slab_y)

    # Tiny scalar finalize: combine per-core partials, mean over true N, sqrt.
    # float(n_elems) is a static Python value -> no int32 overflow concerns.
    return jnp.sqrt(jnp.sum(partial_sums) / float(n_elems))


if __name__ == "__main__":
    key = jax.random.PRNGKey(0)

    def _check(shape, rtol, atol):
        k1, k2 = jax.random.split(jax.random.fold_in(key, hash(shape) % 1000))
        y_hat = jax.random.normal(k1, shape, dtype=jnp.float32)
        y = jax.random.normal(k2, shape, dtype=jnp.float32)
        result = jax.block_until_ready(rmse_pallas(y_hat, y))
        ref = jnp.sqrt(jnp.mean((y_hat - y) ** 2))
        assert jnp.allclose(result, ref, rtol=rtol, atol=atol), (shape, result, ref)
        return result

    # Primary small forecasting-style input (B, C, H, W).
    _check((2, 4, 16, 16), rtol=1e-6, atol=1e-6)
    # Exercise the multi-tile + 2-way-split + ragged-last-tile path.
    _check((2, 3, 100, 256), rtol=1e-5, atol=1e-6)
    # Exercise the non-multiple-of-128 (lane-pad) path.
    _check((3, 5, 7, 11), rtol=1e-5, atol=1e-6)

    print("KERNEL_OK")
</pallas_src>

<mosaic_0001>
module attributes {stable_mosaic.version = 11 : i64} {
  func.func @_rmse_partial_kernel(%arg0: i32, %arg1: i32, %arg2: memref<16x128xf32, #tpu.memory_space<vmem>>, %arg3: memref<16x128xf32, #tpu.memory_space<vmem>>, %arg4: memref<1x1xf32, #tpu.memory_space<vmem>>, %arg5: memref<16x128xf32, #tpu.memory_space<vmem>>) attributes {dimension_semantics = [#tpu.dimension_semantics<parallel>, #tpu.dimension_semantics<arbitrary>], iteration_bounds = array<i64: 1, 1>, scalar_prefetch = 0 : i64, scratch_operands = 1 : i64, tpu.core_type = #tpu.core_type<tc>, window_params = [{transform_indices = @transform_0, window_bounds = array<i64: 16, 128>}, {transform_indices = @transform_1, window_bounds = array<i64: 16, 128>}, {transform_indices = @transform_2, window_bounds = array<i64: 1, 1>}]} {
    %c0_i32 = arith.constant 0 : i32
    %0 = arith.cmpi eq, %arg1, %c0_i32 : i32
    %1 = arith.extui %0 : i1 to i32
    %c0_i32_0 = arith.constant 0 : i32
    %2 = arith.cmpi ne, %1, %c0_i32_0 : i32
    scf.if %2 {
      %cst = arith.constant 0.000000e+00 : f32
      %13 = vector.broadcast %cst : f32 to vector<16x128xf32>
      %c0_10 = arith.constant 0 : index
      %c0_11 = arith.constant 0 : index
      %14 = vector.load %arg5[%c0_10, %c0_11] : memref<16x128xf32, #tpu.memory_space<vmem>>, vector<16x128xf32>
      tpu.vector_store %arg5[%c0_10, %c0_11], %13 {strides = array<i32>} : memref<16x128xf32, #tpu.memory_space<vmem>>, vector<16x128xf32>,
    } else {
    }
    %c0 = arith.constant 0 : index
    %c0_1 = arith.constant 0 : index
    %3 = vector.load %arg2[%c0, %c0_1] : memref<16x128xf32, #tpu.memory_space<vmem>>, vector<16x128xf32>
    %c0_2 = arith.constant 0 : index
    %c0_3 = arith.constant 0 : index
    %4 = vector.load %arg3[%c0_2, %c0_3] : memref<16x128xf32, #tpu.memory_space<vmem>>, vector<16x128xf32>
    %5 = arith.subf %3, %4 : vector<16x128xf32>
    %c0_4 = arith.constant 0 : index
    %c0_5 = arith.constant 0 : index
    %6 = vector.load %arg5[%c0_4, %c0_5] : memref<16x128xf32, #tpu.memory_space<vmem>>, vector<16x128xf32>
    %7 = arith.mulf %5, %5 : vector<16x128xf32>
    %8 = arith.addf %6, %7 : vector<16x128xf32>
    %c0_6 = arith.constant 0 : index
    %c0_7 = arith.constant 0 : index
    %9 = vector.load %arg5[%c0_6, %c0_7] : memref<16x128xf32, #tpu.memory_space<vmem>>, vector<16x128xf32>
    tpu.vector_store %arg5[%c0_6, %c0_7], %8 {strides = array<i32>} : memref<16x128xf32, #tpu.memory_space<vmem>>, vector<16x128xf32>,
    %c0_i32_8 = arith.constant 0 : i32
    %10 = arith.cmpi eq, %arg1, %c0_i32_8 : i32
    %11 = arith.extui %10 : i1 to i32
    %c0_i32_9 = arith.constant 0 : i32
    %12 = arith.cmpi ne, %11, %c0_i32_9 : i32
    scf.if %12 {
      %c0_10 = arith.constant 0 : index
      %c0_11 = arith.constant 0 : index
      %13 = vector.load %arg5[%c0_10, %c0_11] : memref<16x128xf32, #tpu.memory_space<vmem>>, vector<16x128xf32>
      %14 = vector.shape_cast %13 : vector<16x128xf32> to vector<1x16x128xf32>
      %cst = arith.constant dense<0.000000e+00> : vector<1xf32>
      %15 = vector.multi_reduction <add>, %14, %cst [1, 2] : vector<1x16x128xf32> to vector<1xf32>
      %16 = vector.shape_cast %15 : vector<1xf32> to vector<1x1x1xf32>
      %17 = vector.extract %16[0, 0, 0] : f32 from vector<1x1x1xf32>
      %18 = vector.broadcast %17 : f32 to vector<1x1xf32>
      %c0_12 = arith.constant 0 : index
      %c0_13 = arith.constant 0 : index
      %19 = vector.load %arg4[%c0_12, %c0_13] : memref<1x1xf32, #tpu.memory_space<vmem>>, vector<1x1xf32>
      tpu.vector_store %arg4[%c0_12, %c0_13], %18 {strides = array<i32>} : memref<1x1xf32, #tpu.memory_space<vmem>>, vector<1x1xf32>,
    } else {
    }
    return
  }
  func.func @transform_0(%arg0: i32, %arg1: i32) -> (i32, i32) {
    %c1_i32 = arith.constant 1 : i32
    %0 = arith.muli %arg0, %c1_i32 : i32
    %1 = arith.addi %0, %arg1 : i32
    %c0_i32 = arith.constant 0 : i32
    %c0_i32_0 = arith.constant 0 : i32
    return %1, %c0_i32 : i32, i32
  }
  func.func @transform_1(%arg0: i32, %arg1: i32) -> (i32, i32) {
    %c1_i32 = arith.constant 1 : i32
    %0 = arith.muli %arg0, %c1_i32 : i32
    %1 = arith.addi %0, %arg1 : i32
    %c0_i32 = arith.constant 0 : i32
    %c0_i32_0 = arith.constant 0 : i32
    return %1, %c0_i32 : i32, i32
  }
  func.func @transform_2(%arg0: i32, %arg1: i32) -> (i32, i32) {
    %c0_i32 = arith.constant 0 : i32
    %c0_i32_0 = arith.constant 0 : i32
    return %arg0, %c0_i32 : i32, i32
  }
}

</mosaic_0001>

<bundles_post_ra>
// kernel: tpu_custom_call.1
= control target key start
LH: loop header
LB: loop body
LE: loop exit
PB: predicated region body
PF: predicated region fallthrough
CT: control target
= control target key end

     0   :  { %7 = vsyncpa [#allocation4], 0  ;;  %s226_s0 = inlined_call_operand.hbm [shape: f32[16,128], index: 0, kind: input, shape index: {}]   ;;  %s227_s1 = inlined_call_operand.hbm [shape: f32[16,128], index: 1, kind: input, shape index: {}]   ;;  %s228_s2 = inlined_call_operand.hbm [shape: f32[1,1], index: 2, kind: output, shape index: {}]  }
   0x1   :  { %8 = vsyncpa [#allocation7], 0 }
   0x2   :  { %9 = vsyncpa [#allocation5], 0  ;;  %s18_s11 = sshll.u32 %s226_s0, 4  ;;  %s197_s12 = smov [#allocation3]   ;;  %s19_s11 = int_to_ptr.hbm [resolvable:$true] %s18_s11 }
   0x3   :  { %s20_s13 = sshll.u32 %s197_s12, 4  ;;  %s35_s16 = sshll.u32 %s227_s1, 4  ;;  %s21_s13 = int_to_ptr.vmem [resolvable:$true] %s20_s13  ;;  %s36_s16 = int_to_ptr.hbm [resolvable:$true] %s35_s16 }
   0x4   :  { %s198_s17 = smov 128   ;;  %s199_s18 = smov 8  }
   0x5   :  { %26 = dma.hbm_to_vmem [thread:$0]  %s19_s11, 256, %s21_s13, [#allocation4], %s198_s17, %s198_s17, %s199_s18  }
   0x6   :  { %s200_s19 = smov [#allocation6]  }
   0x7   :  { %s37_s20 = sshll.u32 %s200_s19, 4  ;;  %s38_s20 = int_to_ptr.vmem [resolvable:$true] %s37_s20 }
   0x8   :  { %43 = dma.hbm_to_vmem [thread:$0]  %s36_s16, 256, %s38_s20, [#allocation7], %s198_s17, %s198_s17, %s199_s18  }
   0x9   :  { %191 = dma.done.wait [#allocation4], 256  }
   0xa   :  { %192 = vsyncadd [#allocation4], 4294967040 }
   0xb   :  { %193 = dma.done.wait [#allocation7], 256  }
   0xc   :  { %194 = vsyncadd [#allocation7], 4294967040  ;;  %v62_v0 = vld [vmem:[#allocation3] sm:$0xff]  ;;  %v63_v1 = vld [vmem:[#allocation3 + $0x8] sm:$0xff]  ;;  %s201_s0 = smov [#allocation8]   ;;  %s101_s23 = sshll.u32 %s228_s2, 4  ;;  %s102_s23 = int_to_ptr.hbm [resolvable:$true] %s101_s23 }
   0xd   :  { %v64_v2 = vld [vmem:[#allocation6] sm:$0xff]  ;;  %v65_v3 = vld [vmem:[#allocation6 + $0x8] sm:$0xff]  ;;  %s99_s1 = sshll.u32 %s201_s0, 4  ;;  %vm92_vm0 = vcmask 0   ;;  %s100_s1 = int_to_ptr.vmem [resolvable:$true] %s99_s1 }
   0xe   :  { %v66_v4 = vsub.f32 %v62_v0, %v64_v2  ;;  %v67_v5 = vsub.f32 %v63_v1, %v65_v3 }
  0x10   :  { %v70_v6 = vmul.f32 %v66_v4, %v66_v4  ;;  %v71_v7 = vmul.f32 %v67_v5, %v67_v5 }
  0x12   :  { %v81_v8 = vadd.f32 %v71_v7, %v70_v6 }
  0x14   :  { %82 = vadd.xlane.f32.xlu0 %v81_v8 }
  0x87   :  { %v83_v9 = vpop.xlane.xlu0 %82 }
  0x88   :  { %v84_v10 = vrot.slane %v83_v9, 4 }
  0x8a   :  { %v85_v11 = vadd.f32 %v84_v10, %v83_v9 }
  0x8c   :  { %v86_v12 = vrot.slane %v85_v11, 2 }
  0x8e   :  { %v87_v13 = vadd.f32 %v86_v12, %v85_v11 }
  0x90   :  { %v88_v14 = vrot.slane %v87_v13, 1 }
  0x92   :  { %v89_v15 = vadd.f32 %v88_v14, %v87_v13 }
  0x94   :  { %112 = vpush %v89_v15 }
  0xc5   :  { %s113_s24 = spop %112 }
  0xc6   :  { %v91_v16 = vstv %s113_s24 }
  0xc7   :  { %93 = vst.msk [vmem:[#allocation8] sm:$0x1] %vm92_vm0, %v91_v16 }
  0xc8   :  { %104 = dma.vmem_to_hbm [thread:$0]  %s100_s1, 16, %s102_s23, [#allocation5]  }
  0xc9   :  { %195 = dma.done.wait [#allocation5], 16  }
  0xca   :  { %196 = vsyncadd [#allocation5], 4294967280 }
  0xcb   :  { %109 = vsyncpa [#allocation4], 1 }
  0xcc   :  { %110 = vsyncpa [#allocation7], 1 }
  0xcd   :  { %111 = vsyncpa [#allocation5], 1 }

</bundles_post_ra>
